<compile_context>
chip_gen: v6e
topology: v6e:2x2x1
jax: 0.10.0
libtpu: 0.0.40
codegen_flags: <defaults>
</compile_context>

<pallas_src>
import functools
import math

import jax
import jax.numpy as jnp
from jax import lax
from jax.experimental import pallas as pl
from jax.experimental.pallas import tpu as pltpu

LOG2E = 1.4426950408889634

# GEMM tile targets (lane-aligned, review: 512 halves redundant re-reads).
TM_TARGET = 512
TN_TARGET = 512
TK_TARGET = 512
# Attention tiles: tq=128, tkv=256 (matches 256-wide v6e/v7x MXU; harmless on v5e).
TQ_TARGET = 128
TKV_TARGET = 256

# 48 MiB: above v5e (16) / v6e (32) scoped defaults, below v7x's 64 MiB physical.
VMEM_LIMIT_BYTES = 48 * 1024 * 1024


def _pick_tile(dim: int, target: int) -> int:
    """Largest tile <= target (halving) that evenly divides dim, else dim."""
    if dim <= target:
        return dim
    t = target
    while t >= 8:
        if dim % t == 0:
            return t
        t //= 2
    # TODO(synk): replace the full-dim fallback with a pl.cdiv grid + masked
    # last tile for non-power-of-two dims (can create oversized blocks).
    return dim


# ----------------------------------------------------------------------------
# Tiled GEMM: out = x @ w (+ b); bf16 MXU operands, f32 accumulation.
# ----------------------------------------------------------------------------
def _matmul_kernel(x_ref, w_ref, o_ref, acc_ref):
    @pl.when(pl.program_id(2) == 0)
    def _init():
        acc_ref[...] = jnp.zeros(acc_ref.shape, acc_ref.dtype)

    acc_ref[...] += jnp.dot(x_ref[...].astype(jnp.bfloat16),
                            w_ref[...].astype(jnp.bfloat16),
                            preferred_element_type=jnp.float32)

    @pl.when(pl.program_id(2) == pl.num_programs(2) - 1)
    def _store():
        o_ref[...] = acc_ref[...].astype(o_ref.dtype)


def _matmul_bias_kernel(x_ref, w_ref, b_ref, o_ref, acc_ref):
    @pl.when(pl.program_id(2) == 0)
    def _init():
        acc_ref[...] = jnp.zeros(acc_ref.shape, acc_ref.dtype)

    acc_ref[...] += jnp.dot(x_ref[...].astype(jnp.bfloat16),
                            w_ref[...].astype(jnp.bfloat16),
                            preferred_element_type=jnp.float32)

    @pl.when(pl.program_id(2) == pl.num_programs(2) - 1)
    def _store():
        o_ref[...] = (acc_ref[...] + b_ref[...].astype(jnp.float32)
                      ).astype(o_ref.dtype)


def linear_pallas(x2d, w, b=None, *, out_dtype=None, tm_target=TM_TARGET,
                  tn_target=TN_TARGET, tk_target=TK_TARGET):
    """x2d: (M, K), w: (K, N) [pre-transposed, bf16], b: (N,) f32 or None."""
    M, K = x2d.shape
    K2, N = w.shape
    assert K == K2, (K, K2)
    if out_dtype is None:
        out_dtype = x2d.dtype
    tm = _pick_tile(M, tm_target)
    tn = _pick_tile(N, tn_target)
    tk = _pick_tile(K, tk_target)
    grid = (M // tm, N // tn, K // tk)

    in_specs = [
        pl.BlockSpec((tm, tk), lambda i, j, k: (i, k)),
        pl.BlockSpec((tk, tn), lambda i, j, k: (k, j)),
    ]
    if b is None:
        kernel = _matmul_kernel
        args = (x2d, w)
    else:
        kernel = _matmul_bias_kernel
        in_specs.append(pl.BlockSpec((1, tn), lambda i, j, k: (0, j)))
        args = (x2d, w, b.reshape(1, N))

    cost = pl.CostEstimate(
        flops=2 * M * K * N,
        transcendentals=0,
        bytes_accessed=(x2d.dtype.itemsize * M * K * (N // tn)
                        + w.dtype.itemsize * K * N * (M // tm)
                        + jnp.dtype(out_dtype).itemsize * M * N),
    )

    return pl.pallas_call(
        kernel,
        out_shape=jax.ShapeDtypeStruct((M, N), out_dtype),
        grid=grid,
        in_specs=in_specs,
        out_specs=pl.BlockSpec((tm, tn), lambda i, j, k: (i, j)),
        scratch_shapes=[pltpu.VMEM((tm, tn), jnp.float32)],
        compiler_params=pltpu.CompilerParams(
            dimension_semantics=("parallel", "parallel", "arbitrary"),
            vmem_limit_bytes=VMEM_LIMIT_BYTES,
        ),
        cost_estimate=cost,
    )(*args)


# ----------------------------------------------------------------------------
# Flash attention over packed (3, B, H, N, D) qkv, one head per grid step.
# Softmax scale * log2(e) is pre-folded into the q projection, so scores are
# already in the log2 domain and the kernel uses exp2 throughout.
# ----------------------------------------------------------------------------
def _flash_attn_kernel(q_ref, k_ref, v_ref, o_ref,
                       m_ref, l_ref, acc_ref, oacc_ref, *, num_heads):
    h = pl.program_id(2)
    ki = pl.program_id(3)
    nkv = pl.num_programs(3)

    @pl.when(ki == 0)
    def _init():
        m_ref[...] = jnp.full(m_ref.shape, -jnp.inf, m_ref.dtype)
        l_ref[...] = jnp.zeros(l_ref.shape, l_ref.dtype)
        acc_ref[...] = jnp.zeros(acc_ref.shape, acc_ref.dtype)

    q = q_ref[...].astype(jnp.bfloat16)        # (tq, D)  (scale*log2e pre-folded)
    k = k_ref[...].astype(jnp.bfloat16)        # (tkv, D)
    v = v_ref[...].astype(jnp.bfloat16)        # (tkv, D)

    # Contract head_dim directly (no explicit K transpose); f32 accumulation.
    s = lax.dot_general(q, k, (((1,), (1,)), ((), ())),
                        preferred_element_type=jnp.float32)   # (tq, tkv), log2 domain

    m_prev = m_ref[...]                                        # (tq, 1)
    m_new = jnp.maximum(m_prev, jnp.max(s, axis=-1, keepdims=True))
    alpha = jnp.exp2(m_prev - m_new)                           # f32, EUP
    p = jnp.exp2(s - m_new)                                    # (tq, tkv) f32

    l_ref[...] = alpha * l_ref[...] + jnp.sum(p, axis=-1, keepdims=True)
    acc_ref[...] = alpha * acc_ref[...] + jnp.dot(
        p.astype(jnp.bfloat16), v, preferred_element_type=jnp.float32)
    m_ref[...] = m_new

    @pl.when(ki == nkv - 1)
    def _finalize():
        # Exact normalization (off the inner KV loop); stage this head's result.
        oacc_ref[h] = acc_ref[...] / l_ref[...]

    @pl.when((ki == nkv - 1) & (h == num_heads - 1))
    def _flush():
        # Static lane-concat of all heads -> one lane-dense (tq, C) store; this
        # also fuses the (B,H,N,D)->(B,N,C) transpose into the kernel.
        parts = [oacc_ref[i] for i in range(num_heads)]
        o_ref[...] = jnp.concatenate(parts, axis=-1).astype(o_ref.dtype)


def sdpa_pallas(qkv, *, out_dtype=None, tq_target=TQ_TARGET,
                tkv_target=TKV_TARGET):
    """qkv: (3, B, H, N, D) packed q/k/v -> attention output (B, N, C)."""
    _, B, H, N, D = qkv.shape
    C = H * D
    if out_dtype is None:
        out_dtype = qkv.dtype
    tq = _pick_tile(N, tq_target)
    tkv = _pick_tile(N, tkv_target)
    nq, nkv = N // tq, N // tkv
    grid = (B, nq, H, nkv)

    # Per-head blocks; H is a leading dim of the array so size-1 blocks there
    # are layout-legal.  Q is resident across the KV axis.
    q_spec = pl.BlockSpec((None, None, None, tq, D),
                          lambda b, qi, h, ki: (0, b, h, qi, 0))
    k_spec = pl.BlockSpec((None, None, None, tkv, D),
                          lambda b, qi, h, ki: (1, b, h, ki, 0))
    v_spec = pl.BlockSpec((None, None, None, tkv, D),
                          lambda b, qi, h, ki: (2, b, h, ki, 0))
    # Output block is (tq, C), resident across (H, KV): lane-dense stores.
    o_spec = pl.BlockSpec((None, tq, C), lambda b, qi, h, ki: (b, qi, 0))

    itemsize = qkv.dtype.itemsize
    cost = pl.CostEstimate(
        flops=4 * B * H * N * N * D,                 # QK^T + PV
        transcendentals=B * H * N * N,               # exp2
        bytes_accessed=(itemsize * B * N * C * (1 + 2 * nq)
                        + jnp.dtype(out_dtype).itemsize * B * N * C),
    )

    kernel = functools.partial(_flash_attn_kernel, num_heads=H)
    return pl.pallas_call(
        kernel,
        out_shape=jax.ShapeDtypeStruct((B, N, C), out_dtype),
        grid=grid,
        in_specs=[q_spec, k_spec, v_spec],
        out_specs=o_spec,
        scratch_shapes=[
            pltpu.VMEM((tq, 1), jnp.float32),        # running max m (per head)
            pltpu.VMEM((tq, 1), jnp.float32),        # running sum l (per head)
            pltpu.VMEM((tq, D), jnp.float32),        # per-head accumulator
            pltpu.VMEM((H, tq, D), jnp.float32),     # staged per-head outputs
        ],
        compiler_params=pltpu.CompilerParams(
            dimension_semantics=("parallel", "parallel", "arbitrary", "arbitrary"),
            vmem_limit_bytes=VMEM_LIMIT_BYTES,
        ),
        cost_estimate=cost,
    )(qkv, qkv, qkv)


# ----------------------------------------------------------------------------
# Parameter preparation (done ONCE, outside the forward pass)
# ----------------------------------------------------------------------------
def prepare_params(qkv_w_torch, proj_w_torch, proj_b, num_heads):
    """Torch-layout (out, in) f32 weights -> kernel params.

    - pre-transpose to (in, out)
    - fold softmax_scale * log2(e) into the q output columns of qkv_w
      (exact because qkv_bias=False and qk_norm=False)
    - store matmul weights in bf16 (MXU dtype; halves weight HBM reads);
      bias stays f32.
    """
    C = proj_w_torch.shape[0]
    D = C // num_heads
    scale = (D ** -0.5) * LOG2E
    qkv_w = jnp.asarray(qkv_w_torch, jnp.float32).T           # (C, 3C)
    qkv_w = qkv_w.at[:, :C].multiply(scale)                   # q columns only
    return {
        "qkv_w": qkv_w.astype(jnp.bfloat16),
        "proj_w": jnp.asarray(proj_w_torch, jnp.float32).T.astype(jnp.bfloat16),
        "proj_b": jnp.asarray(proj_b, jnp.float32),
    }


# ----------------------------------------------------------------------------
# Full Attention.forward (past_kv=None, return_kv=False, eval mode)
# ----------------------------------------------------------------------------
def attention_forward(x, params, num_heads):
    B, N, C = x.shape
    H = num_heads
    D = C // H

    # qkv projection (qkv_bias=False).  bf16 output: the attention MXU consumes
    # bf16 anyway, so this halves the qkv HBM round trip with no extra rounding.
    qkv = linear_pallas(x.reshape(B * N, C), params["qkv_w"],
                        out_dtype=jnp.bfloat16)                       # (B*N, 3C)

    # (B*N,3C)->(B,N,3,H,D) is a free reshape; the permute mirrors torch's
    # permute(2,0,3,1,4) and keeps H leading for per-head BlockSpecs.
    # TODO(synk): folding this XLA permute into the attention in_specs would
    # save one HBM round trip of qkv but needs size-1 blocks on a second-minor
    # dim (or in-kernel relayout) that is risky at arbitrary head_dim.
    qkv = qkv.reshape(B, N, 3, H, D).transpose(2, 0, 3, 1, 4)         # (3,B,H,N,D)

    # q_norm / k_norm are Identity (qk_norm=False); dropouts are no-ops (eval).
    attn = sdpa_pallas(qkv, out_dtype=jnp.bfloat16)                   # (B, N, C)

    out = linear_pallas(attn.reshape(B * N, C), params["proj_w"],
                        params["proj_b"], out_dtype=x.dtype)          # (B*N, C)
    return out.reshape(B, N, C)
    # TODO(synk): past_kv concatenation / return_kv branch not implemented
    # (module is exercised with the default past_kv=None, return_kv=False).


# ----------------------------------------------------------------------------
# Pure-JAX f32 reference (uses the original torch-layout weights)
# ----------------------------------------------------------------------------
def attention_reference(x, qkv_w_torch, proj_w_torch, proj_b, num_heads):
    B, N, C = x.shape
    H, D = num_heads, C // num_heads
    scale = D ** (-0.5)
    qkv = x @ qkv_w_torch.T
    qkv = qkv.reshape(B, N, 3, H, D).transpose(2, 0, 3, 1, 4)
    q, k, v = qkv[0], qkv[1], qkv[2]
    s = jnp.einsum("bhqd,bhkd->bhqk", q, k) * scale
    p = jax.nn.softmax(s, axis=-1)
    o = jnp.einsum("bhqk,bhkd->bhqd", p, v)
    o = o.transpose(0, 2, 1, 3).reshape(B, N, C)
    return o @ proj_w_torch.T + proj_b


if __name__ == "__main__":
    # Small shapes consistent with the module: B=2, N=16, C=128, 4 heads (D=32).
    B, N, C = 2, 16, 128
    num_heads = 4

    key = jax.random.PRNGKey(0)
    kx, kqkv, kpw, kpb = jax.random.split(key, 4)
    x = jax.random.normal(kx, (B, N, C), dtype=jnp.float32)

    bound = 1.0 / math.sqrt(C)
    # PyTorch nn.Linear stores weights as (out, in).
    qkv_w_torch = jax.random.uniform(kqkv, (3 * C, C), jnp.float32, -bound, bound)
    proj_w_torch = jax.random.uniform(kpw, (C, C), jnp.float32, -bound, bound)
    proj_b = jax.random.uniform(kpb, (C,), jnp.float32, -bound, bound)

    params = prepare_params(qkv_w_torch, proj_w_torch, proj_b, num_heads)

    fwd = jax.jit(functools.partial(attention_forward, num_heads=num_heads))
    out = jax.block_until_ready(fwd(x, params))

    ref = attention_reference(x, qkv_w_torch, proj_w_torch, proj_b, num_heads)
    assert out.shape == (B, N, C)
    max_diff = float(jnp.max(jnp.abs(out - ref)))
    # bf16 MXU operands / bf16 intermediates -> mixed-precision tolerance.
    assert jnp.allclose(out, ref, atol=3e-2, rtol=3e-2), (
        "mismatch vs reference, max abs diff = %f" % max_diff)

    print("KERNEL_OK")
</pallas_src>

<mosaic_0001>
module attributes {stable_mosaic.version = 11 : i64} {
  func.func @_matmul_kernel(%arg0: i32, %arg1: i32, %arg2: i32, %arg3: memref<32x128xf32, #tpu.memory_space<vmem>>, %arg4: memref<128x384xbf16, #tpu.memory_space<vmem>>, %arg5: memref<32x384xbf16, #tpu.memory_space<vmem>>, %arg6: memref<32x384xf32, #tpu.memory_space<vmem>>) attributes {dimension_semantics = [#tpu.dimension_semantics<parallel>, #tpu.dimension_semantics<parallel>, #tpu.dimension_semantics<arbitrary>], iteration_bounds = array<i64: 1, 1, 1>, scalar_prefetch = 0 : i64, scratch_operands = 1 : i64, tpu.core_type = #tpu.core_type<tc>, window_params = [{transform_indices = @transform_0, window_bounds = array<i64: 32, 128>}, {transform_indices = @transform_1, window_bounds = array<i64: 128, 384>}, {transform_indices = @transform_2, window_bounds = array<i64: 32, 384>}]} {
    %c0_i32 = arith.constant 0 : i32
    %0 = arith.cmpi eq, %arg2, %c0_i32 : i32
    %1 = arith.extui %0 : i1 to i32
    %c0_i32_0 = arith.constant 0 : i32
    %2 = arith.cmpi ne, %1, %c0_i32_0 : i32
    scf.if %2 {
      %cst_10 = arith.constant 0.000000e+00 : f32
      %13 = vector.broadcast %cst_10 : f32 to vector<32x384xf32>
      %c0_11 = arith.constant 0 : index
      %c0_12 = arith.constant 0 : index
      %14 = vector.load %arg6[%c0_11, %c0_12] : memref<32x384xf32, #tpu.memory_space<vmem>>, vector<32x384xf32>
      tpu.vector_store %arg6[%c0_11, %c0_12], %13 {strides = array<i32>} : memref<32x384xf32, #tpu.memory_space<vmem>>, vector<32x384xf32>,
    } else {
    }
    %c0 = arith.constant 0 : index
    %c0_1 = arith.constant 0 : index
    %3 = vector.load %arg6[%c0, %c0_1] : memref<32x384xf32, #tpu.memory_space<vmem>>, vector<32x384xf32>
    %c0_2 = arith.constant 0 : index
    %c0_3 = arith.constant 0 : index
    %4 = vector.load %arg3[%c0_2, %c0_3] : memref<32x128xf32, #tpu.memory_space<vmem>>, vector<32x128xf32>
    %5 = arith.truncf %4 : vector<32x128xf32> to vector<32x128xbf16>
    %c0_4 = arith.constant 0 : index
    %c0_5 = arith.constant 0 : index
    %6 = vector.load %arg4[%c0_4, %c0_5] : memref<128x384xbf16, #tpu.memory_space<vmem>>, vector<128x384xbf16>
    %cst = arith.constant dense<0.000000e+00> : vector<32x384xf32>
    %7 = tpu.matmul %5, %6, %cst {dimension_numbers = #tpu.dot_dimension_numbers<[1], [0], [0], [1], [0, 0, 1, 1], [], []>} : vector<32x128xbf16>, vector<128x384xbf16>, vector<32x384xf32> -> vector<32x384xf32>
    %8 = arith.addf %3, %7 : vector<32x384xf32>
    %c0_6 = arith.constant 0 : index
    %c0_7 = arith.constant 0 : index
    %9 = vector.load %arg6[%c0_6, %c0_7] : memref<32x384xf32, #tpu.memory_space<vmem>>, vector<32x384xf32>
    tpu.vector_store %arg6[%c0_6, %c0_7], %8 {strides = array<i32>} : memref<32x384xf32, #tpu.memory_space<vmem>>, vector<32x384xf32>,
    %c0_i32_8 = arith.constant 0 : i32
    %10 = arith.cmpi eq, %arg2, %c0_i32_8 : i32
    %11 = arith.extui %10 : i1 to i32
    %c0_i32_9 = arith.constant 0 : i32
    %12 = arith.cmpi ne, %11, %c0_i32_9 : i32
    scf.if %12 {
      %c0_10 = arith.constant 0 : index
      %c0_11 = arith.constant 0 : index
      %13 = vector.load %arg6[%c0_10, %c0_11] : memref<32x384xf32, #tpu.memory_space<vmem>>, vector<32x384xf32>
      %14 = arith.truncf %13 : vector<32x384xf32> to vector<32x384xbf16>
      %c0_12 = arith.constant 0 : index
      %c0_13 = arith.constant 0 : index
      %15 = vector.load %arg5[%c0_12, %c0_13] : memref<32x384xbf16, #tpu.memory_space<vmem>>, vector<32x384xbf16>
      tpu.vector_store %arg5[%c0_12, %c0_13], %14 {strides = array<i32>} : memref<32x384xbf16, #tpu.memory_space<vmem>>, vector<32x384xbf16>,
    } else {
    }
    return
  }
  func.func @transform_0(%arg0: i32, %arg1: i32, %arg2: i32) -> (i32, i32) {
    %c0_i32 = arith.constant 0 : i32
    return %arg0, %arg2 : i32, i32
  }
  func.func @transform_1(%arg0: i32, %arg1: i32, %arg2: i32) -> (i32, i32) {
    %c0_i32 = arith.constant 0 : i32
    return %arg2, %arg1 : i32, i32
  }
  func.func @transform_2(%arg0: i32, %arg1: i32, %arg2: i32) -> (i32, i32) {
    %c0_i32 = arith.constant 0 : i32
    return %arg0, %arg1 : i32, i32
  }
}

module attributes {stable_mosaic.version = 11 : i64} {
  func.func @_flash_attn_kernel(%arg0: i32, %arg1: i32, %arg2: i32, %arg3: i32, %arg4: memref<1x1x1x16x32xbf16, #tpu.memory_space<vmem>>, %arg5: memref<1x1x1x16x32xbf16, #tpu.memory_space<vmem>>, %arg6: memref<1x1x1x16x32xbf16, #tpu.memory_space<vmem>>, %arg7: memref<1x16x128xbf16, #tpu.memory_space<vmem>>, %arg8: memref<16x1xf32, #tpu.memory_space<vmem>>, %arg9: memref<16x1xf32, #tpu.memory_space<vmem>>, %arg10: memref<16x32xf32, #tpu.memory_space<vmem>>, %arg11: memref<4x16x32xf32, #tpu.memory_space<vmem>>) attributes {dimension_semantics = [#tpu.dimension_semantics<parallel>, #tpu.dimension_semantics<parallel>, #tpu.dimension_semantics<arbitrary>, #tpu.dimension_semantics<arbitrary>], iteration_bounds = array<i64: 2, 1, 4, 1>, scalar_prefetch = 0 : i64, scratch_operands = 4 : i64, tpu.core_type = #tpu.core_type<tc>, window_params = [{transform_indices = @transform_0, window_bounds = array<i64: 1, 1, 1, 16, 32>}, {transform_indices = @transform_1, window_bounds = array<i64: 1, 1, 1, 16, 32>}, {transform_indices = @transform_2, window_bounds = array<i64: 1, 1, 1, 16, 32>}, {transform_indices = @transform_3, window_bounds = array<i64: 1, 16, 128>}]} {
    %c0_i32 = arith.constant 0 : i32
    %0 = arith.cmpi eq, %arg3, %c0_i32 : i32
    %1 = arith.extui %0 : i1 to i32
    %c0_i32_0 = arith.constant 0 : i32
    %2 = arith.cmpi ne, %1, %c0_i32_0 : i32
    scf.if %2 {
      %cst_34 = arith.constant 0xFF800000 : f32
      %41 = vector.broadcast %cst_34 : f32 to vector<16x1xf32>
      %c0_35 = arith.constant 0 : index
      %c0_36 = arith.constant 0 : index
      %42 = vector.load %arg8[%c0_35, %c0_36] : memref<16x1xf32, #tpu.memory_space<vmem>>, vector<16x1xf32>
      tpu.vector_store %arg8[%c0_35, %c0_36], %41 {strides = array<i32>} : memref<16x1xf32, #tpu.memory_space<vmem>>, vector<16x1xf32>,
      %cst_37 = arith.constant 0.000000e+00 : f32
      %43 = vector.broadcast %cst_37 : f32 to vector<16x1xf32>
      %c0_38 = arith.constant 0 : index
      %c0_39 = arith.constant 0 : index
      %44 = vector.load %arg9[%c0_38, %c0_39] : memref<16x1xf32, #tpu.memory_space<vmem>>, vector<16x1xf32>
      tpu.vector_store %arg9[%c0_38, %c0_39], %43 {strides = array<i32>} : memref<16x1xf32, #tpu.memory_space<vmem>>, vector<16x1xf32>,
      %cst_40 = arith.constant 0.000000e+00 : f32
      %45 = vector.broadcast %cst_40 : f32 to vector<16x32xf32>
      %c0_41 = arith.constant 0 : index
      %c0_42 = arith.constant 0 : index
      %46 = vector.load %arg10[%c0_41, %c0_42] : memref<16x32xf32, #tpu.memory_space<vmem>>, vector<16x32xf32>
      tpu.vector_store %arg10[%c0_41, %c0_42], %45 {strides = array<i32>} : memref<16x32xf32, #tpu.memory_space<vmem>>, vector<16x32xf32>,
    } else {
    }
    %c0 = arith.constant 0 : index
    %c0_1 = arith.constant 0 : index
    %c0_2 = arith.constant 0 : index
    %c0_3 = arith.constant 0 : index
    %c0_4 = arith.constant 0 : index
    %3 = vector.load %arg4[%c0, %c0_1, %c0_2, %c0_3, %c0_4] : memref<1x1x1x16x32xbf16, #tpu.memory_space<vmem>>, vector<1x1x1x16x32xbf16>
    %4 = vector.shape_cast %3 : vector<1x1x1x16x32xbf16> to vector<16x32xbf16>
    %c0_5 = arith.constant 0 : index
    %c0_6 = arith.constant 0 : index
    %c0_7 = arith.constant 0 : index
    %c0_8 = arith.constant 0 : index
    %c0_9 = arith.constant 0 : index
    %5 = vector.load %arg5[%c0_5, %c0_6, %c0_7, %c0_8, %c0_9] : memref<1x1x1x16x32xbf16, #tpu.memory_space<vmem>>, vector<1x1x1x16x32xbf16>
    %6 = vector.shape_cast %5 : vector<1x1x1x16x32xbf16> to vector<16x32xbf16>
    %c0_10 = arith.constant 0 : index
    %c0_11 = arith.constant 0 : index
    %c0_12 = arith.constant 0 : index
    %c0_13 = arith.constant 0 : index
    %c0_14 = arith.constant 0 : index
    %7 = vector.load %arg6[%c0_10, %c0_11, %c0_12, %c0_13, %c0_14] : memref<1x1x1x16x32xbf16, #tpu.memory_space<vmem>>, vector<1x1x1x16x32xbf16>
    %8 = vector.shape_cast %7 : vector<1x1x1x16x32xbf16> to vector<16x32xbf16>
    %cst = arith.constant dense<0.000000e+00> : vector<16x16xf32>
    %9 = tpu.matmul %4, %6, %cst {dimension_numbers = #tpu.dot_dimension_numbers<[1], [1], [0], [0], [0, 0, 1, 0], [], []>} : vector<16x32xbf16>, vector<16x32xbf16>, vector<16x16xf32> -> vector<16x16xf32>
    %c0_15 = arith.constant 0 : index
    %c0_16 = arith.constant 0 : index
    %10 = vector.load %arg8[%c0_15, %c0_16] : memref<16x1xf32, #tpu.memory_space<vmem>>, vector<16x1xf32>
    %cst_17 = arith.constant dense<0xFF800000> : vector<16xf32>
    %11 = vector.multi_reduction <maximumf>, %9, %cst_17 [1] : vector<16x16xf32> to vector<16xf32>
    %12 = vector.shape_cast %11 : vector<16xf32> to vector<16x1xf32>
    %13 = arith.maximumf %10, %12 : vector<16x1xf32>
    %14 = arith.subf %10, %13 : vector<16x1xf32>
    %15 = math.exp2 %14 : vector<16x1xf32>
    %16 = vector.broadcast %13 : vector<16x1xf32> to vector<16x16xf32>
    %17 = arith.subf %9, %16 : vector<16x16xf32>
    %18 = math.exp2 %17 : vector<16x16xf32>
    %c0_18 = arith.constant 0 : index
    %c0_19 = arith.constant 0 : index
    %19 = vector.load %arg9[%c0_18, %c0_19] : memref<16x1xf32, #tpu.memory_space<vmem>>, vector<16x1xf32>
    %20 = arith.mulf %15, %19 : vector<16x1xf32>
    %cst_20 = arith.constant dense<0.000000e+00> : vector<16xf32>
    %21 = vector.multi_reduction <add>, %18, %cst_20 [1] : vector<16x16xf32> to vector<16xf32>
    %22 = vector.shape_cast %21 : vector<16xf32> to vector<16x1xf32>
    %23 = arith.addf %20, %22 : vector<16x1xf32>
    %c0_21 = arith.constant 0 : index
    %c0_22 = arith.constant 0 : index
    %24 = vector.load %arg9[%c0_21, %c0_22] : memref<16x1xf32, #tpu.memory_space<vmem>>, vector<16x1xf32>
    tpu.vector_store %arg9[%c0_21, %c0_22], %23 {strides = array<i32>} : memref<16x1xf32, #tpu.memory_space<vmem>>, vector<16x1xf32>,
    %c0_23 = arith.constant 0 : index
    %c0_24 = arith.constant 0 : index
    %25 = vector.load %arg10[%c0_23, %c0_24] : memref<16x32xf32, #tpu.memory_space<vmem>>, vector<16x32xf32>
    %26 = vector.broadcast %15 : vector<16x1xf32> to vector<16x32xf32>
    %27 = arith.mulf %26, %25 : vector<16x32xf32>
    %28 = arith.truncf %18 : vector<16x16xf32> to vector<16x16xbf16>
    %cst_25 = arith.constant dense<0.000000e+00> : vector<16x32xf32>
    %29 = tpu.matmul %28, %8, %cst_25 {dimension_numbers = #tpu.dot_dimension_numbers<[1], [0], [0], [1], [0, 0, 1, 1], [], []>} : vector<16x16xbf16>, vector<16x32xbf16>, vector<16x32xf32> -> vector<16x32xf32>
    %30 = arith.addf %27, %29 : vector<16x32xf32>
    %c0_26 = arith.constant 0 : index
    %c0_27 = arith.constant 0 : index
    %31 = vector.load %arg10[%c0_26, %c0_27] : memref<16x32xf32, #tpu.memory_space<vmem>>, vector<16x32xf32>
    tpu.vector_store %arg10[%c0_26, %c0_27], %30 {strides = array<i32>} : memref<16x32xf32, #tpu.memory_space<vmem>>, vector<16x32xf32>,
    %c0_28 = arith.constant 0 : index
    %c0_29 = arith.constant 0 : index
    %32 = vector.load %arg8[%c0_28, %c0_29] : memref<16x1xf32, #tpu.memory_space<vmem>>, vector<16x1xf32>
    tpu.vector_store %arg8[%c0_28, %c0_29], %13 {strides = array<i32>} : memref<16x1xf32, #tpu.memory_space<vmem>>, vector<16x1xf32>,
    %c0_i32_30 = arith.constant 0 : i32
    %33 = arith.cmpi eq, %arg3, %c0_i32_30 : i32
    %34 = arith.extui %33 : i1 to i32
    %c0_i32_31 = arith.constant 0 : i32
    %35 = arith.cmpi ne, %34, %c0_i32_31 : i32
    scf.if %35 {
      %c0_34 = arith.constant 0 : index
      %c0_35 = arith.constant 0 : index
      %41 = vector.load %arg10[%c0_34, %c0_35] : memref<16x32xf32, #tpu.memory_space<vmem>>, vector<16x32xf32>
      %c0_36 = arith.constant 0 : index
      %c0_37 = arith.constant 0 : index
      %42 = vector.load %arg9[%c0_36, %c0_37] : memref<16x1xf32, #tpu.memory_space<vmem>>, vector<16x1xf32>
      %43 = vector.broadcast %42 : vector<16x1xf32> to vector<16x32xf32>
      %44 = arith.divf %41, %43 : vector<16x32xf32>
      %45 = arith.index_cast %arg2 : i32 to index
      %c0_38 = arith.constant 0 : index
      %c0_39 = arith.constant 0 : index
      %46 = vector.load %arg11[%45, %c0_38, %c0_39] : memref<4x16x32xf32, #tpu.memory_space<vmem>>, vector<1x16x32xf32>
      %47 = vector.shape_cast %46 : vector<1x16x32xf32> to vector<16x32xf32>
      %48 = vector.shape_cast %44 : vector<16x32xf32> to vector<1x16x32xf32>
      tpu.vector_store %arg11[%45, %c0_38, %c0_39], %48 {strides = array<i32>} : memref<4x16x32xf32, #tpu.memory_space<vmem>>, vector<1x16x32xf32>,
    } else {
    }
    %c0_i32_32 = arith.constant 0 : i32
    %36 = arith.cmpi eq, %arg3, %c0_i32_32 : i32
    %c3_i32 = arith.constant 3 : i32
    %37 = arith.cmpi eq, %arg2, %c3_i32 : i32
    %38 = arith.andi %36, %37 : i1
    %39 = arith.extui %38 : i1 to i32
    %c0_i32_33 = arith.constant 0 : i32
    %40 = arith.cmpi ne, %39, %c0_i32_33 : i32
    scf.if %40 {
      %c0_34 = arith.constant 0 : index
      %c0_35 = arith.constant 0 : index
      %c0_36 = arith.constant 0 : index
      %41 = vector.load %arg11[%c0_34, %c0_35, %c0_36] : memref<4x16x32xf32, #tpu.memory_space<vmem>>, vector<1x16x32xf32>
      %42 = vector.shape_cast %41 : vector<1x16x32xf32> to vector<16x32xf32>
      %c1 = arith.constant 1 : index
      %c0_37 = arith.constant 0 : index
      %c0_38 = arith.constant 0 : index
      %43 = vector.load %arg11[%c1, %c0_37, %c0_38] : memref<4x16x32xf32, #tpu.memory_space<vmem>>, vector<1x16x32xf32>
      %44 = vector.shape_cast %43 : vector<1x16x32xf32> to vector<16x32xf32>
      %c2 = arith.constant 2 : index
      %c0_39 = arith.constant 0 : index
      %c0_40 = arith.constant 0 : index
      %45 = vector.load %arg11[%c2, %c0_39, %c0_40] : memref<4x16x32xf32, #tpu.memory_space<vmem>>, vector<1x16x32xf32>
      %46 = vector.shape_cast %45 : vector<1x16x32xf32> to vector<16x32xf32>
      %c3 = arith.constant 3 : index
      %c0_41 = arith.constant 0 : index
      %c0_42 = arith.constant 0 : index
      %47 = vector.load %arg11[%c3, %c0_41, %c0_42] : memref<4x16x32xf32, #tpu.memory_space<vmem>>, vector<1x16x32xf32>
      %48 = vector.shape_cast %47 : vector<1x16x32xf32> to vector<16x32xf32>
      %49 = tpu.concatenate %42, %44, %46, %48 in 1 : vector<16x32xf32>, vector<16x32xf32>, vector<16x32xf32>, vector<16x32xf32> -> vector<16x128xf32>
      %50 = arith.truncf %49 : vector<16x128xf32> to vector<16x128xbf16>
      %c0_43 = arith.constant 0 : index
      %c0_44 = arith.constant 0 : index
      %c0_45 = arith.constant 0 : index
      %51 = vector.load %arg7[%c0_43, %c0_44, %c0_45] : memref<1x16x128xbf16, #tpu.memory_space<vmem>>, vector<1x16x128xbf16>
      %52 = vector.shape_cast %51 : vector<1x16x128xbf16> to vector<16x128xbf16>
      %53 = vector.shape_cast %50 : vector<16x128xbf16> to vector<1x16x128xbf16>
      tpu.vector_store %arg7[%c0_43, %c0_44, %c0_45], %53 {strides = array<i32>} : memref<1x16x128xbf16, #tpu.memory_space<vmem>>, vector<1x16x128xbf16>,
    } else {
    }
    return
  }
  func.func @transform_0(%arg0: i32, %arg1: i32, %arg2: i32, %arg3: i32) -> (i32, i32, i32, i32, i32) {
    %c0_i32 = arith.constant 0 : i32
    %c0_i32_0 = arith.constant 0 : i32
    %c0_i32_1 = arith.constant 0 : i32
    return %c0_i32, %arg0, %arg2, %arg1, %c0_i32_0 : i32, i32, i32, i32, i32
  }
  func.func @transform_1(%arg0: i32, %arg1: i32, %arg2: i32, %arg3: i32) -> (i32, i32, i32, i32, i32) {
    %c1_i32 = arith.constant 1 : i32
    %c0_i32 = arith.constant 0 : i32
    %c0_i32_0 = arith.constant 0 : i32
    return %c1_i32, %arg0, %arg2, %arg3, %c0_i32 : i32, i32, i32, i32, i32
  }
  func.func @transform_2(%arg0: i32, %arg1: i32, %arg2: i32, %arg3: i32) -> (i32, i32, i32, i32, i32) {
    %c2_i32 = arith.constant 2 : i32
    %c0_i32 = arith.constant 0 : i32
    %c0_i32_0 = arith.constant 0 : i32
    return %c2_i32, %arg0, %arg2, %arg3, %c0_i32 : i32, i32, i32, i32, i32
  }
  func.func @transform_3(%arg0: i32, %arg1: i32, %arg2: i32, %arg3: i32) -> (i32, i32, i32) {
    %c0_i32 = arith.constant 0 : i32
    %c0_i32_0 = arith.constant 0 : i32
    return %arg0, %arg1, %c0_i32 : i32, i32, i32
  }
}

module attributes {stable_mosaic.version = 11 : i64} {
  func.func @_matmul_bias_kernel(%arg0: i32, %arg1: i32, %arg2: i32, %arg3: memref<32x128xbf16, #tpu.memory_space<vmem>>, %arg4: memref<128x128xbf16, #tpu.memory_space<vmem>>, %arg5: memref<1x128xf32, #tpu.memory_space<vmem>>, %arg6: memref<32x128xf32, #tpu.memory_space<vmem>>, %arg7: memref<32x128xf32, #tpu.memory_space<vmem>>) attributes {dimension_semantics = [#tpu.dimension_semantics<parallel>, #tpu.dimension_semantics<parallel>, #tpu.dimension_semantics<arbitrary>], iteration_bounds = array<i64: 1, 1, 1>, scalar_prefetch = 0 : i64, scratch_operands = 1 : i64, tpu.core_type = #tpu.core_type<tc>, window_params = [{transform_indices = @transform_0, window_bounds = array<i64: 32, 128>}, {transform_indices = @transform_1, window_bounds = array<i64: 128, 128>}, {transform_indices = @transform_2, window_bounds = array<i64: 1, 128>}, {transform_indices = @transform_3, window_bounds = array<i64: 32, 128>}]} {
    %c0_i32 = arith.constant 0 : i32
    %0 = arith.cmpi eq, %arg2, %c0_i32 : i32
    %1 = arith.extui %0 : i1 to i32
    %c0_i32_0 = arith.constant 0 : i32
    %2 = arith.cmpi ne, %1, %c0_i32_0 : i32
    scf.if %2 {
      %cst_10 = arith.constant 0.000000e+00 : f32
      %12 = vector.broadcast %cst_10 : f32 to vector<32x128xf32>
      %c0_11 = arith.constant 0 : index
      %c0_12 = arith.constant 0 : index
      %13 = vector.load %arg7[%c0_11, %c0_12] : memref<32x128xf32, #tpu.memory_space<vmem>>, vector<32x128xf32>
      tpu.vector_store %arg7[%c0_11, %c0_12], %12 {strides = array<i32>} : memref<32x128xf32, #tpu.memory_space<vmem>>, vector<32x128xf32>,
    } else {
    }
    %c0 = arith.constant 0 : index
    %c0_1 = arith.constant 0 : index
    %3 = vector.load %arg7[%c0, %c0_1] : memref<32x128xf32, #tpu.memory_space<vmem>>, vector<32x128xf32>
    %c0_2 = arith.constant 0 : index
    %c0_3 = arith.constant 0 : index
    %4 = vector.load %arg3[%c0_2, %c0_3] : memref<32x128xbf16, #tpu.memory_space<vmem>>, vector<32x128xbf16>
    %c0_4 = arith.constant 0 : index
    %c0_5 = arith.constant 0 : index
    %5 = vector.load %arg4[%c0_4, %c0_5] : memref<128x128xbf16, #tpu.memory_space<vmem>>, vector<128x128xbf16>
    %cst = arith.constant dense<0.000000e+00> : vector<32x128xf32>
    %6 = tpu.matmul %4, %5, %cst {dimension_numbers = #tpu.dot_dimension_numbers<[1], [0], [0], [1], [0, 0, 1, 1], [], []>} : vector<32x128xbf16>, vector<128x128xbf16>, vector<32x128xf32> -> vector<32x128xf32>
    %7 = arith.addf %3, %6 : vector<32x128xf32>
    %c0_6 = arith.constant 0 : index
    %c0_7 = arith.constant 0 : index
    %8 = vector.load %arg7[%c0_6, %c0_7] : memref<32x128xf32, #tpu.memory_space<vmem>>, vector<32x128xf32>
    tpu.vector_store %arg7[%c0_6, %c0_7], %7 {strides = array<i32>} : memref<32x128xf32, #tpu.memory_space<vmem>>, vector<32x128xf32>,
    %c0_i32_8 = arith.constant 0 : i32
    %9 = arith.cmpi eq, %arg2, %c0_i32_8 : i32
    %10 = arith.extui %9 : i1 to i32
    %c0_i32_9 = arith.constant 0 : i32
    %11 = arith.cmpi ne, %10, %c0_i32_9 : i32
    scf.if %11 {
      %c0_10 = arith.constant 0 : index
      %c0_11 = arith.constant 0 : index
      %12 = vector.load %arg7[%c0_10, %c0_11] : memref<32x128xf32, #tpu.memory_space<vmem>>, vector<32x128xf32>
      %c0_12 = arith.constant 0 : index
      %c0_13 = arith.constant 0 : index
      %13 = vector.load %arg5[%c0_12, %c0_13] : memref<1x128xf32, #tpu.memory_space<vmem>>, vector<1x128xf32>
      %14 = vector.broadcast %13 : vector<1x128xf32> to vector<32x128xf32>
      %15 = arith.addf %12, %14 : vector<32x128xf32>
      %c0_14 = arith.constant 0 : index
      %c0_15 = arith.constant 0 : index
      %16 = vector.load %arg6[%c0_14, %c0_15] : memref<32x128xf32, #tpu.memory_space<vmem>>, vector<32x128xf32>
      tpu.vector_store %arg6[%c0_14, %c0_15], %15 {strides = array<i32>} : memref<32x128xf32, #tpu.memory_space<vmem>>, vector<32x128xf32>,
    } else {
    }
    return
  }
  func.func @transform_0(%arg0: i32, %arg1: i32, %arg2: i32) -> (i32, i32) {
    %c0_i32 = arith.constant 0 : i32
    return %arg0, %arg2 : i32, i32
  }
  func.func @transform_1(%arg0: i32, %arg1: i32, %arg2: i32) -> (i32, i32) {
    %c0_i32 = arith.constant 0 : i32
    return %arg2, %arg1 : i32, i32
  }
  func.func @transform_2(%arg0: i32, %arg1: i32, %arg2: i32) -> (i32, i32) {
    %c0_i32 = arith.constant 0 : i32
    %c0_i32_0 = arith.constant 0 : i32
    return %c0_i32, %arg1 : i32, i32
  }
  func.func @transform_3(%arg0: i32, %arg1: i32, %arg2: i32) -> (i32, i32) {
    %c0_i32 = arith.constant 0 : i32
    return %arg0, %arg1 : i32, i32
  }
}

</mosaic_0001>

<bundles_post_ra>
// kernel: attention_forward.3
= control target key start
LH: loop header
LB: loop body
LE: loop exit
PB: predicated region body
PF: predicated region fallthrough
CT: control target
= control target key end

     0   :  { %7 = vsyncpa [#allocation4], 0  ;;  %s636_s0 = inlined_call_operand.hbm [shape: f32[32,128], index: 0, kind: input, shape index: {}]   ;;  %s637_s1 = inlined_call_operand.hbm [shape: bf16[128,384], index: 1, kind: input, shape index: {}]   ;;  %s638_s2 = inlined_call_operand.vmem [shape: bf16[32,384], index: 2, kind: output, shape index: {}]  }
   0x1   :  { %8 = vsyncpa [#allocation6], 0  ;;  %s582_s9 = smov [#allocation3]  }
   0x2   :  { %s14_s10 = sshll.u32 %s582_s9, 4  ;;  %s15_s10 = int_to_ptr.vmem [resolvable:$true] %s14_s10 }
   0x3   :  { %s546_s11 = scalar_lea.vmem %s15_s10, 512  ;;  %p551_p1 = scmp.lt.s32.totalorder %s15_s10, %s15_s10 }
   0x4   :  { %p547_p0 = scmp.ne.s32.totalorder %s15_s10, %s546_s11  ;;  %p552_p2 = scmp.lt.s32.totalorder %s546_s11, %s546_s11 }
   0x6   :  { %p553_p3 = por %p552_p2, %p551_p1 }
   0x8   :  { %p554_p4 = pnand %p553_p3, %p547_p0 }
   0xa   :  { %557 = shalt.err (!%p554_p4)
}
   0xb   :  { %s583_s12 = smov 128   ;;  %s584_s13 = smov 8  }
   0xc   :  { %20 = dma.hbm_to_vmem [thread:$0]  %s636_s0, 512, %s15_s10, [#allocation4], %s583_s12, %s583_s12, %s584_s13  }
   0xd   :  { %s585_s16 = smov [#allocation5]  }
   0xe   :  { %s26_s17 = sshll.u32 %s585_s16, 4  ;;  %s27_s17 = int_to_ptr.vmem [resolvable:$true] %s26_s17 }
   0xf   :  { %s566_s18 = scalar_lea.vmem %s27_s17, 3072  ;;  %p571_p6 = scmp.lt.s32.totalorder %s27_s17, %s27_s17 }
  0x10   :  { %p567_p5 = scmp.ne.s32.totalorder %s27_s17, %s566_s18  ;;  %p572_p7 = scmp.lt.s32.totalorder %s566_s18, %s566_s18 }
  0x12   :  { %p573_p8 = por %p572_p7, %p571_p6 }
  0x14   :  { %p574_p9 = pnand %p573_p8, %p567_p5 }
  0x16   :  { %577 = shalt.err (!%p574_p9)
}
  0x17   :  { %s586_s19 = smov 192   ;;  %s587_s20 = smov 12  }
  0x18   :  { %32 = dma.hbm_to_vmem [thread:$0]  %s637_s1, 3072, %s27_s17, [#allocation6], %s586_s19, %s586_s19, %s587_s20  }
  0x19   :  { %578 = dma.done.wait [#allocation4], 512  }
  0x1a   :  { %579 = vsyncadd [#allocation4], 4294966784 }
  0x1b   :  { %580 = dma.done.wait [#allocation6], 3072  }
  0x1c   :  { %581 = vsyncadd [#allocation6], 4294964224  ;;  %v588_v0 = vmov 0   ;;  %v506_v1 = vld [vmem:[#allocation5 + $0xac] ss:$12 sps:$4 sm:$0xff]   ;;  %v68_v18 = vld [vmem:[#allocation3] sm:$0xff] }
  0x1d   :  { %266 = vmatprep.mubr.bf16.mxu0 %v588_v0  ;;  %v508_v2 = vld [vmem:[#allocation5 + $0xa8] ss:$12 sps:$4 sm:$0xff]   ;;  %234 = vmatprep.subr.bf16.mxu0 %v506_v1  ;;  %v509_v3 = vld [vmem:[#allocation5 + $0xb0] ss:$12 sps:$4 sm:$0xff]   ;;  %v513_v6 = vld [vmem:[#allocation5 + $0x98] ss:$12 sps:$4 sm:$0xff]  }
  0x1e   :  { %235 = vmatpush1.bf16.msra.mxu0 %v508_v2  ;;  %v510_v4 = vld [vmem:[#allocation5 + $0x94] ss:$12 sps:$4 sm:$0xff]   ;;  %v512_v5 = vld [vmem:[#allocation5 + $0x90] ss:$12 sps:$4 sm:$0xff]   ;;  %479 = vmatprep.subr.bf16.mxu1 %v509_v3  ;;  %v516_v9 = vld [vmem:[#allocation5 + $0x78] ss:$12 sps:$4 sm:$0xff]  }
  0x1f   :  { %480 = vmatpush3.bf16.msra.mxu1 %v509_v3  ;;  %236 = vmatprep.subr.bf16.mxu0 %v510_v4  ;;  %v514_v7 = vld [vmem:[#allocation5 + $0x7c] ss:$12 sps:$4 sm:$0xff]   ;;  %v517_v8 = vld [vmem:[#allocation5 + $0x80] ss:$12 sps:$4 sm:$0xff]   ;;  %v518_v10 = vld [vmem:[#allocation5 + $0x64] ss:$12 sps:$4 sm:$0xff]  }
  0x20   :  { %481 = vmatprep.subr.bf16.mxu1 %v513_v6  ;;  %v521_v11 = vld [vmem:[#allocation5 + $0x68] ss:$12 sps:$4 sm:$0xff]   ;;  %v520_v12 = vld [vmem:[#allocation5 + $0x60] ss:$12 sps:$4 sm:$0xff]   ;;  %v525_v14 = vld [vmem:[#allocation5 + $0x50] ss:$12 sps:$4 sm:$0xff]  }
  0x21   :  { %v522_v13 = vld [vmem:[#allocation5 + $0x4c] ss:$12 sps:$4 sm:$0xff]   ;;  %v524_v15 = vld [vmem:[#allocation5 + $0x48] ss:$12 sps:$4 sm:$0xff]   ;;  %v528_v19 = vld [vmem:[#allocation5 + $0x30] ss:$12 sps:$4 sm:$0xff]  }
  0x22   :  { %237 = vmatpush1.bf16.msra.mxu0 %v512_v5  ;;  %v526_v16 = vld [vmem:[#allocation5 + $0x34] ss:$12 sps:$4 sm:$0xff]   ;;  %v529_v17 = vld [vmem:[#allocation5 + $0x38] ss:$12 sps:$4 sm:$0xff]   ;;  %v69_v20 = vld [vmem:[#allocation3 + $0x8] sm:$0xff] }
  0x23   :  { %238 = vmatprep.subr.bf16.mxu0 %v514_v7  ;;  %482 = vmatpush3.bf16.msra.mxu1 %v513_v6  ;;  %v530_v21 = vld [vmem:[#allocation5 + $0x1c] ss:$12 sps:$4 sm:$0xff]   ;;  %v72_v22 = vpack.c.bf16 %v69_v20, %v68_v18  ;;  %v533_v23 = vld [vmem:[#allocation5 + $0x20] ss:$12 sps:$4 sm:$0xff]   ;;  %v532_v24 = vld [vmem:[#allocation5 + $0x18] ss:$12 sps:$4 sm:$0xff]  }
  0x24   :  { %483 = vmatprep.subr.bf16.mxu1 %v517_v8  ;;  %v534_v25 = vld [vmem:[#allocation5 + $0x4] ss:$12 sps:$4 sm:$0xff]   ;;  %v537_v26 = vld [vmem:[#allocation5 + $0x8] ss:$12 sps:$4 sm:$0xff]   ;;  %v536_v27 = vld [vmem:[#allocation5] ss:$12 sps:$4 sm:$0xff]  }
  0x25   :  { %495 = vmatprep.mubr.bf16.mxu1 %v72_v22  ;;  %v70_v28 = vld [vmem:[#allocation3 + $0x10] sm:$0xff]  ;;  %v71_v29 = vld [vmem:[#allocation3 + $0x18] sm:$0xff] }
  0x26   :  { %239 = vmatpush1.bf16.msra.mxu0 %v516_v9  ;;  %v73_v30 = vpack.c.bf16 %v71_v29, %v70_v28 }
  0x27   :  { %240 = vmatprep.subr.bf16.mxu0 %v518_v10  ;;  %484 = vmatpush3.bf16.msra.mxu1 %v517_v8 }
  0x28   :  { %485 = vmatprep.subr.bf16.mxu1 %v521_v11 }
  0x2a   :  { %241 = vmatpush1.bf16.msra.mxu0 %v520_v12 }
  0x2b   :  { %242 = vmatprep.subr.bf16.mxu0 %v522_v13  ;;  %486 = vmatpush3.bf16.msra.mxu1 %v521_v11 }
  0x2c   :  { %487 = vmatprep.subr.bf16.mxu1 %v525_v14 }
  0x2e   :  { %243 = vmatpush1.bf16.msra.mxu0 %v524_v15 }
  0x2f   :  { %244 = vmatprep.subr.bf16.mxu0 %v526_v16  ;;  %488 = vmatpush3.bf16.msra.mxu1 %v525_v14 }
  0x30   :  { %489 = vmatprep.subr.bf16.mxu1 %v529_v17 }
  0x32   :  { %245 = vmatpush1.bf16.msra.mxu0 %v528_v19 }
  0x33   :  { %246 = vmatprep.subr.bf16.mxu0 %v530_v21  ;;  %490 = vmatpush3.bf16.msra.mxu1 %v529_v17 }
  0x34   :  { %491 = vmatprep.subr.bf16.mxu1 %v533_v23 }
  0x36   :  { %247 = vmatpush1.bf16.msra.mxu0 %v532_v24 }
  0x37   :  { %248 = vmatprep.subr.bf16.mxu0 %v534_v25  ;;  %492 = vmatpush3.bf16.msra.mxu1 %v533_v23 }
  0x38   :  { %493 = vmatprep.subr.bf16.mxu1 %v537_v26 }
  0x3a   :  { %249 = vmatpush1.bf16.msra.mxu0 %v536_v27 }
  0x3b   :  { %494 = vmatpush3.bf16.msra.mxu1 %v537_v26 }
  0x3d   :  { %267 = vmatmul.mubr.bf16.vlgmr.msra.gmra.mxu0 %v72_v22 }
  0x3e   :  { %276 = vmatprep.mubr.bf16.mxu0 %v588_v0  ;;  %496 = vmatmul.mubr.bf16.vlgmr.msra.gmra.mxu1 %v73_v30 }
  0x45   :  { %277 = vmatmul.mubr.bf16.gmra.mxu0 %v73_v30 }
  0xfd   :  { %v268_v31 = vpop.f32.mrf.mxu0 }
  0xfe   :  { %v497_v33 = vpop.f32.mrf.mxu1 }
  0xff   :  { %v270_v32 = vpop.f32.mrf.mxu0  ;;  %v466_v35 = vpack.c.bf16 %v497_v33, %v497_v33 }
 0x100   :  { %v461_v34 = vpack.c.bf16 %v270_v32, %v268_v31  ;;  %v321_v37 = vpop.f32.mrf.mxu1 }
 0x101   :  { %v272_v36 = vpop.f32.mrf.mxu0  ;;  %420 = vst [vmem:[%s638_s2 + $0x20] sm:$0xf] %v466_v35  ;;  %v462_v38 = vpack.c.bf16 %v321_v37, %v321_v37 }
 0x102   :  { %415 = vst [vmem:[%s638_s2] sm:$0xff] %v461_v34  ;;  %v498_v40 = vpop.f32.mrf.mxu1 }
 0x103   :  { %v274_v39 = vpop.f32.mrf.mxu0  ;;  %416 = vst [vmem:[%s638_s2 + $0x8] sm:$0xf] %v462_v38  ;;  %v468_v42 = vpack.c.bf16 %v498_v40, %v498_v40 }
 0x104   :  { %v463_v41 = vpack.c.bf16 %v274_v39, %v272_v36  ;;  %v324_v44 = vpop.f32.mrf.mxu1 }
 0x105   :  { %v278_v43 = vpop.f32.mrf.mxu0  ;;  %422 = vst [vmem:[%s638_s2 + $0x2c] sm:$0xf] %v468_v42  ;;  %v464_v45 = vpack.c.bf16 %v324_v44, %v324_v44 }
 0x106   :  { %417 = vst [vmem:[%s638_s2 + $0xc] sm:$0xff] %v463_v41 }
 0x107   :  { %v280_v46 = vpop.f32.mrf.mxu0  ;;  %418 = vst [vmem:[%s638_s2 + $0x14] sm:$0xf] %v464_v45 }
 0x108   :  { %v465_v47 = vpack.c.bf16 %v280_v46, %v278_v43 }
 0x109   :  { %v282_v48 = vpop.f32.mrf.mxu0 }
 0x10a   :  { %419 = vst [vmem:[%s638_s2 + $0x18] sm:$0xff] %v465_v47 }
 0x10b   :  { %v284_v49 = vpop.f32.mrf.mxu0 }
 0x10c   :  { %v467_v50 = vpack.c.bf16 %v284_v49, %v282_v48 }
 0x10e   :  { %421 = vst [vmem:[%s638_s2 + $0x24] sm:$0xff] %v467_v50 }
 0x10f   :  { %427 = vsyncpa [#allocation4], 1 }
 0x110   :  { %428 = vsyncpa [#allocation6], 1 }

// kernel: attention_forward.4
= control target key start
LH: loop header
LB: loop body
LE: loop exit
PB: predicated region body
PF: predicated region fallthrough
CT: control target
= control target key end

     0   :  { %s979_s12 = smov 0   ;;  %s981_s13 = smov 0   ;;  %s1075_s0 = inlined_call_operand.vmem [shape: bf16[3,2,4,16,32], index: 0, kind: input, shape index: {}, may-alias: {0,1,2}]   ;;  %s1076_s1 = inlined_call_operand.vmem [shape: bf16[3,2,4,16,32], index: 1, kind: input, shape index: {}, may-alias: {0,1,2}]   ;;  %s1077_s2 = inlined_call_operand.vmem [shape: bf16[3,2,4,16,32], index: 2, kind: input, shape index: {}, may-alias: {0,1,2}]   ;;  %s1078_s3 = inlined_call_operand.vmem [shape: bf16[2,16,128], index: 3, kind: output, shape index: {}]  }
   0x1   :  { %s983_s14 = smov 0   ;;  %s985_s15 = smov 0  }
   0x2   :  { %s987_s16 = smov 0  }
   0x3 LB: > { %s31_s17 = sadd.s32 1, %s942_s14  ;;  %s39_s18 = sadd.s32 1, %s946_s15  ;;  %s950_s16 = sphi %s987_s16, %s13_s16   ;;  %s946_s15 = sphi %s985_s15, %s1082_s15   ;;  %s942_s14 = sphi %s983_s14, %s1081_s14   ;;  %s938_s13 = sphi %s981_s13, %s1080_s13   ;;  %s934_s12 = sphi %s979_s12, %s1079_s12  }
   0x4   : > { %p33_p0 = scmp.ge.s32.totalorder %s31_s17, 4  ;;  %p781_p1 = scmp.ge.s32.totalorder %s950_s16, 1 }
   0x5   : > { %p226_p2 = scmp.lt.s32.totalorder %s950_s16, 9 }
   0x6   : > { %s1084_s17 = smov (%p33_p0, %s31_s17), 0  ;;  %s1086_s18 = smov (!%p33_p0, %s39_s18), %s946_s15 }
   0x7   : > { %p227_p3 = pnand %p781_p1, %p226_p2  ;;  %p41_p4 = scmp.ge.s32.totalorder %s1086_s18, 2 }
   0x8   : > { %p291_p5 = scmp.lt.s32.totalorder (!%p227_p3), %s938_s13, 1  ;;  %p293_p6 = scmp.lt.s32.totalorder (!%p227_p3), %s934_s12, 3 }
   0x9   : > { %s1088_s18 = smov (%p41_p4, %s1086_s18), 0  ;;  %230 = sbr.rel (%p227_p3) target bundleno = 935 (0x3a7), region = 32 }
   0xa   : > { %p561_p7 = scmp.eq.s32.totalorder (!%p227_p3), %s934_s12, 3  ;;  %s802_s9 = sshll.u32 (!%p227_p3), %s934_s12, 4 }
   0xb   : > { %s558_s10 = scalar_lea.vmem (!%p227_p3), [#allocation5], %s802_s9 }
   0xe   : > { %vm354_vm0 = vcmask 261120   ;;  %v952_v0 = vmov 0.0   ;;  %vm953_vm1 = vmmov 0   ;;  %s1090_s13 = smov (!%p291_p5, %s938_s13), 1  ;;  %vm349_vm2 = vcmask 7168   ;;  %s956_s11 = smov (%p561_p7), 32  }
   0xf   : > { %821 = vmatprep.subr.bf16.mxu0 %v952_v0  ;;  %355 = vst.msk [vmem:[#allocation4] sm:$0xff] %vm354_vm0, %v952_v0  ;;  %356 = vst.msk [vmem:[#allocation4 + $0x8] sm:$0xff] %vm354_vm0, %v952_v0  ;;  %823 = vmatprep.mubr.msk.bf16.mxu0 %vm953_vm1, %v952_v0  ;;  %s294_s19 = scalar_select %p293_p6, %s934_s12, 3  ;;  %v954_v4 = vmov -inf   ;;  %vm423_vm3 = vcmask 130048   ;;  %v955_v11 = vmov 0  }
  0x10   : > { %827 = vmatprep.subr.bf16.mxu1 %v952_v0  ;;  %829 = vmatprep.mubr.msk.bf16.mxu1 %vm953_vm1, %v952_v0  ;;  %s783_s20 = sshll.u32 %s1090_s13, 3  ;;  %350 = vst.msk [vmem:[#allocation2] sm:$0xff] %vm349_vm2, %v954_v4  ;;  %351 = vst.msk [vmem:[#allocation2 + $0x8] sm:$0xff] %vm349_vm2, %v954_v4  ;;  %s957_s13 = smov (%p561_p7), 96   ;;  %vm603_vm4 = vcmask (%p561_p7), 523264   ;;  %vm606_vm5 = vcmask (%p561_p7), 785408  }
  0x11   : > { %s782_s21 = sshll.u32 %s294_s19, 1  ;;  %s1018_s24 = scalar_lea.vmem %s1078_s3, %s783_s20  ;;  %352 = vst.msk [vmem:[#allocation3] sm:$0xff] %vm349_vm2, %v952_v0  ;;  %353 = vst.msk [vmem:[#allocation3 + $0x8] sm:$0xff] %vm349_vm2, %v952_v0  ;;  %880 = vset.pattern.permute.xlu1 %v955_v11  ;;  %881 = vset.pattern.permute.xlu0 %v955_v11 }
  0x12   : > { %s300_s25 = sadd.s32 %s783_s20, %s782_s21  ;;  %s958_s19 = smov (%p561_p7), 64  }
  0x13   : > { %s1020_s26 = sshll.u32 %s300_s25, 2 }
  0x14   : > { %s704_s29 = scalar_lea.vmem %s1076_s1, %s1020_s26  ;;  %s302_s5 = scalar_lea.vmem %s1075_s0, %s1020_s26 }
  0x15   : > { %v882_v1 = vld [vmem:[%s704_s29 + $0x40] sm:$0xff]   ;;  %s711_s8 = scalar_lea.vmem %s1077_s2, %s1020_s26 }
  0x16   : > { %v378_v2 = vsel %vm354_vm0, %v882_v1, 0  ;;  %v883_v3 = vld [vmem:[%s302_s5] sm:$0xff]   ;;  %v466_v51 = vld [vmem:[#allocation4 + $0x8] sm:$0xff] }
  0x17   : > { %822 = vmatpush3.bf16.xpose.msra.mxu0 %v378_v2  ;;  %v421_v12 = vld [vmem:[#allocation2] sm:$0xff]  ;;  %v422_v15 = vld [vmem:[#allocation2 + $0x8] sm:$0xff] }
  0x18   : > { %v884_v20 = vld [vmem:[%s711_s8 + $0x80] sm:$0xff]   ;;  %v450_v31 = vld [vmem:[#allocation3] sm:$0xff]  ;;  %v451_v35 = vld [vmem:[#allocation3 + $0x8] sm:$0xff] }
  0x19   : > { %828 = vmatpush3.bf16.msra.mxu1 %v884_v20  ;;  %v465_v47 = vld [vmem:[#allocation4] sm:$0xff] }
  0x1e   : > { %824 = vmatmul.mubr.msk.bf16.vlgmr.msra.gmra.mxu0 %vm354_vm0, %v883_v3 }
  0xde   : > { %v414_v5 = vpop.f32.mrf.mxu0 }
  0xdf   : > { %v424_v6 = vsel %vm423_vm3, %v414_v5, -inf }
  0xe0   : > { %425 = vmax.xlane.f32.xlu0 %v424_v6  ;;  %v825_v7 = vpop.f32.mrf.mxu0 }
  0xe2   : > { %v417_v8 = vpop.f32.mrf.mxu0 }
  0xe3   : > { %v427_v9 = vsel %vm423_vm3, %v417_v8, -inf }
  0xe4   : > { %428 = vmax.xlane.f32.xlu0 %v427_v9  ;;  %v826_v10 = vpop.f32.mrf.mxu0 }
 0x169   : > { %v426_v13 = vpop.xlane.xlu0 %425 }
 0x16a   : > { %v430_v14 = vmax.f32 %v421_v12, %v426_v13 }
 0x16c   : > { %v432_v16 = vsub.f32 %v421_v12, %v430_v14  ;;  %534 = vst.msk [vmem:[#allocation2] sm:$0xff] %vm349_vm2, %v430_v14  ;;  %438 = vperm.xlu1 %880, %v430_v14  }
 0x16d   : > { %v429_v17 = vpop.xlane.xlu0 %428 }
 0x16e   : > { %v431_v18 = vmax.f32 %v422_v15, %v429_v17 }
 0x170   : > { %v433_v19 = vsub.f32 %v422_v15, %v431_v18  ;;  %535 = vst.msk [vmem:[#allocation2 + $0x8] sm:$0xff] %vm349_vm2, %v431_v18  ;;  %443 = vperm.xlu1 %880, %v431_v18  }
 0x1e7   : > { %v439_v21 = vpop.permute.xlu1 %438 }
 0x1e8   : > { %v446_v22 = vsub.f32 %v414_v5, %v439_v21 }
 0x1ea   : > { %885 = vpow2.f32 %v446_v22 }
 0x1eb   : > { %v444_v23 = vpop.permute.xlu1 %443 }
 0x1ec   : > { %v447_v24 = vsub.f32 %v417_v8, %v444_v23 }
 0x1ee   : > { %887 = vpow2.f32 %v447_v24 }
 0x1ef   : > { %889 = vpow2.f32 %v432_v16 }
 0x1f0   : > { %891 = vpow2.f32 %v433_v19 }
 0x1f7   : > { %v886_v25 = vpop.eup %885 }
 0x1f8   : > { %v454_v26 = vsel %vm423_vm3, %v886_v25, 0.0 }
 0x1f9   : > { %455 = vadd.xlane.f32.xlu0 %v454_v26 }
 0x1fb   : > { %v888_v27 = vpop.eup %887 }
 0x1fc   : > { %v457_v28 = vsel %vm423_vm3, %v888_v27, 0.0  ;;  %v479_v29 = vpack.c.bf16 %v888_v27, %v886_v25  ;;  %v890_v30 = vpop.eup %889 }
 0x1fd   : > { %458 = vadd.xlane.f32.xlu1 %v457_v28  ;;  %v452_v32 = vmul.f32 %v890_v30, %v450_v31  ;;  %v892_v33 = vpop.eup %891 }
 0x1fe   : > { %830 = vmatmul.mubr.msk.bf16.vlgmr.msra.gmra.mxu1 %vm423_vm3, %v479_v29  ;;  %v453_v37 = vmul.f32 %v892_v33, %v451_v35 }
 0x282   : > { %v456_v34 = vpop.xlane.xlu0 %455 }
 0x283   : > { %v460_v36 = vadd.f32 %v456_v34, %v452_v32 }
 0x285   : > { %463 = vst.msk [vmem:[#allocation3] sm:$0xff] %vm349_vm2, %v460_v36 }
 0x286   : > { %v459_v38 = vpop.xlane.xlu1 %458 }
 0x287   : > { %v461_v39 = vadd.f32 %v459_v38, %v453_v37 }
 0x289   : > { %464 = vst.msk [vmem:[#allocation3 + $0x8] sm:$0xff] %vm349_vm2, %v461_v39 }
 0x28c   : > { %v541_v40 = vld [vmem:[#allocation3] sm:$0xff] }
 0x28d   : > { %545 = vperm.xlu0 %881, %v541_v40  }
 0x290   : > { %v542_v41 = vld [vmem:[#allocation3 + $0x8] sm:$0xff] }
 0x291   : > { %550 = vperm.xlu1 %880, %v542_v41   ;;  %469 = vperm.xlu0 %881, %v890_v30  }
 0x295   : > { %474 = vperm.xlu0 %881, %v892_v33  }
 0x2be   : > { %v523_v42 = vpop.f32.mrf.mxu1 }
 0x2c0   : > { %v831_v43 = vpop.f32.mrf.mxu1 }
 0x2c2   : > { %v526_v44 = vpop.f32.mrf.mxu1 }
 0x2c4   : > { %v832_v45 = vpop.f32.mrf.mxu1 }
 0x308   : > { %v546_v46 = vpop.permute.xlu0 %545 }
 0x309   : > { %893 = vrcp.f32 %v546_v46 }
 0x30c   : > { %v551_v48 = vpop.permute.xlu1 %550  ;;  %v470_v49 = vpop.permute.xlu0 %469 }
 0x30d   : > { %v477_v50 = vmul.f32 %v470_v49, %v465_v47  ;;  %895 = vrcp.f32 %v551_v48 }
 0x30f   : > { %v530_v52 = vadd.f32 %v523_v42, %v477_v50 }
 0x310   : > { %v475_v53 = vpop.permute.xlu0 %474 }
 0x311   : > { %532 = vst.msk [vmem:[#allocation4] sm:$0xff] %vm354_vm0, %v530_v52  ;;  %v478_v54 = vmul.f32 %v475_v53, %v466_v51 }
 0x313   : > { %v531_v55 = vadd.f32 %v526_v44, %v478_v54 }
 0x315   : > { %533 = vst.msk [vmem:[#allocation4 + $0x8] sm:$0xff] %vm354_vm0, %v531_v55 }
 0x316   : > { %v894_v56 = vpop.eup %893 }
 0x318   : > { %v539_v57 = vld [vmem:[#allocation4] sm:$0xff] }
 0x319   : > { %v554_v58 = vmul.f32 %v894_v56, %v539_v57 }
 0x31a   : > { %v896_v59 = vpop.eup %895 }
 0x31b   : > { %559 = vst.msk [vmem:[%s558_s10] sm:$0xff] %vm354_vm0, %v554_v58  ;;  %565 = sbr.rel (!%p561_p7) target bundleno = 935 (0x3a7), region = 44 }
 0x31c   : > { %v540_v60 = vld [vmem:[#allocation4 + $0x8] sm:$0xff] }
 0x31d   : > { %v556_v61 = vmul.f32 %v896_v59, %v540_v60 }
 0x31f   : > { %560 = vst.msk [vmem:[%s558_s10 + $0x8] sm:$0xff] %vm354_vm0, %v556_v61 }
 0x326   : > { %v569_v62 = vld [vmem:[#allocation5 + $0x10] sm:$0xff]  ;;  %v570_v63 = vld [vmem:[#allocation5 + $0x18] sm:$0xff]  ;;  %v572_v0 = vld [vmem:[#allocation5 + $0x20] sm:$0xff] }
 0x327   : > { %v897_v1 = vpack.i.bf16 %v570_v63, %v569_v62  ;;  %v573_v2 = vld [vmem:[#allocation5 + $0x28] sm:$0xff]  ;;  %v575_v3 = vld [vmem:[#allocation5 + $0x30] sm:$0xff]  ;;  %v576_v4 = vld [vmem:[#allocation5 + $0x38] sm:$0xff] }
 0x328   : > { %v907_v5 = vpack.i.bf16 %v576_v4, %v575_v3  ;;  %v902_v6 = vpack.i.bf16 %v573_v2, %v572_v0  ;;  %v566_v11 = vld [vmem:[#allocation5] sm:$0xff]  ;;  %v567_v12 = vld [vmem:[#allocation5 + $0x8] sm:$0xff] }
 0x329   : > { %898 = vrot.lane.b32.xlu0 %v897_v1, %s956_s11 }
 0x32a   : > { %908 = vrot.lane.b32.xlu1 %v907_v5, %s957_s13 }
 0x32d   : > { %903 = vrot.lane.b32.xlu0 %v902_v6, %s958_s19 }
 0x39b   : > { %v899_v7 = vpop.permute.xlu0 %898 }
 0x39c   : > { %v909_v8 = vpop.permute.xlu1 %908  ;;  %v901_v9 = vunpack.i.h.bf16 %v899_v7  ;;  %v900_v10 = vunpack.i.l.bf16 %v899_v7 }
 0x39d   : > { %v911_v14 = vunpack.i.h.bf16 %v909_v8  ;;  %v910_v15 = vunpack.i.l.bf16 %v909_v8 }
 0x39e   : > { %v601_v18 = vsel %vm354_vm0, %v566_v11, %v900_v10  ;;  %v602_v19 = vsel %vm354_vm0, %v567_v12, %v901_v9 }
 0x39f   : > { %v904_v13 = vpop.permute.xlu0 %903 }
 0x3a0   : > { %v906_v16 = vunpack.i.h.bf16 %v904_v13  ;;  %v905_v17 = vunpack.i.l.bf16 %v904_v13 }
 0x3a2   : > { %v604_v20 = vsel %vm603_vm4, %v601_v18, %v905_v17  ;;  %v605_v21 = vsel %vm603_vm4, %v602_v19, %v906_v16 }
 0x3a3   : > { %v607_v22 = vsel %vm606_vm5, %v604_v20, %v910_v15  ;;  %v608_v23 = vsel %vm606_vm5, %v605_v21, %v911_v14 }
 0x3a4   : > { %v815_v24 = vpack.c.bf16 %v608_v23, %v607_v22 }
 0x3a6   : > { %816 = vst [vmem:[%s1018_s24] sm:$0xff] %v815_v24  }
 0x3a7 PF: > { %s13_s16 = sadd.s32 1, %s950_s16   ;;  %s1079_s12 = smov %s942_s14 }
 0x3a8   : > { %p10_p8 = scmp.ge.s32.totalorder %s13_s16, 10   ;;  %s1080_s13 = smov %s946_s15 }
 0x3a9   : > { %s1081_s14 = smov %s1084_s17  ;;  %s1082_s15 = smov %s1088_s18 }
 0x3aa   :  { %12 = sbr.rel (!%p10_p8) target bundleno = 3 (0x3), region = 84 }

// kernel: attention_forward.5
= control target key start
LH: loop header
LB: loop body
LE: loop exit
PB: predicated region body
PF: predicated region fallthrough
CT: control target
= control target key end

     0   :  { %s338_s0 = inlined_call_operand.vmem [shape: bf16[32,128], index: 0, kind: input, shape index: {}]   ;;  %s339_s1 = inlined_call_operand.vmem [shape: bf16[128,128], index: 1, kind: input, shape index: {}]   ;;  %s340_s2 = inlined_call_operand.vmem [shape: f32[1,128], index: 2, kind: input, shape index: {}]   ;;  %s341_s3 = inlined_call_operand.hbm [shape: f32[32,128], index: 3, kind: output, shape index: {}]  }
   0x1   :  { %v247_v0 = vld [vmem:[%s339_s1 + $0x38] sm:$0xff]   ;;  %v248_v1 = vld [vmem:[%s339_s1 + $0x30] sm:$0xff]   ;;  %v249_v2 = vld [vmem:[%s339_s1 + $0x28] sm:$0xff]  }
   0x2   :  { %224 = vmatprep.subr.bf16.mxu0 %v247_v0  ;;  %v250_v3 = vld [vmem:[%s339_s1 + $0x20] sm:$0xff]  }
   0x3   :  { %225 = vmatpush3.bf16.msra.mxu0 %v247_v0  ;;  %v255_v4 = vld [vmem:[%s338_s0] sm:$0xff]  }
   0x4   :  { %226 = vmatprep.subr.bf16.mxu0 %v248_v1  ;;  %240 = vmatprep.mubr.bf16.mxu0 %v255_v4 }
   0x7   :  { %227 = vmatpush3.bf16.msra.mxu0 %v248_v1 }
   0x8   :  { %228 = vmatprep.subr.bf16.mxu0 %v249_v2 }
   0x9   :  { %8 = vsyncpa [#allocation4], 0  ;;  %v251_v5 = vld [vmem:[%s339_s1 + $0x18] sm:$0xff]   ;;  %v252_v6 = vld [vmem:[%s339_s1 + $0x10] sm:$0xff]   ;;  %s279_s7 = smov [#allocation3]  }
   0xa   :  { %v253_v7 = vld [vmem:[%s339_s1 + $0x8] sm:$0xff]   ;;  %v254_v8 = vld [vmem:[%s339_s1] sm:$0xff]   ;;  %s192_s8 = sshll.u32 %s279_s7, 4  ;;  %s193_s8 = int_to_ptr.vmem [resolvable:$true] %s192_s8 }
   0xb   :  { %229 = vmatpush3.bf16.msra.mxu0 %v249_v2  ;;  %v256_v9 = vld [vmem:[%s338_s0 + $0x8] sm:$0xff]   ;;  %v213_v10 = vld [vmem:[%s340_s2] ss:$0 sm:$0xff]  ;;  %s257_s0 = scalar_lea.vmem %s193_s8, 512  ;;  %p262_p1 = scmp.lt.s32.totalorder %s193_s8, %s193_s8 }
   0xc   :  { %230 = vmatprep.subr.bf16.mxu0 %v250_v3  ;;  %p258_p0 = scmp.ne.s32.totalorder %s193_s8, %s257_s0  ;;  %p263_p2 = scmp.lt.s32.totalorder %s257_s0, %s257_s0 }
   0xe   :  { %p264_p3 = por %p263_p2, %p262_p1 }
   0xf   :  { %231 = vmatpush3.bf16.msra.mxu0 %v250_v3 }
  0x10   :  { %232 = vmatprep.subr.bf16.mxu0 %v251_v5  ;;  %p265_p4 = pnand %p264_p3, %p258_p0 }
  0x13   :  { %233 = vmatpush3.bf16.msra.mxu0 %v251_v5 }
  0x14   :  { %234 = vmatprep.subr.bf16.mxu0 %v252_v6 }
  0x17   :  { %235 = vmatpush3.bf16.msra.mxu0 %v252_v6 }
  0x18   :  { %236 = vmatprep.subr.bf16.mxu0 %v253_v7 }
  0x1b   :  { %237 = vmatpush3.bf16.msra.mxu0 %v253_v7 }
  0x1c   :  { %238 = vmatprep.subr.bf16.mxu0 %v254_v8 }
  0x1f   :  { %239 = vmatpush3.bf16.msra.mxu0 %v254_v8 }
  0x22   :  { %241 = vmatmul.mubr.bf16.vlgmr.msra.gmra.mxu0 %v256_v9 }
  0xe2   :  { %v242_v11 = vpop.f32.mrf.mxu0 }
  0xe3   :  { %v181_v12 = vadd.f32 %v242_v11, %v213_v10 }
  0xe4   :  { %v142_v13 = vpop.f32.mrf.mxu0 }
  0xe5   :  { %185 = vst [vmem:[#allocation3 + $0x10] sm:$0xff] %v181_v12  ;;  %v179_v14 = vadd.f32 %v213_v10, %v142_v13 }
  0xe6   :  { %v243_v15 = vpop.f32.mrf.mxu0 }
  0xe7   :  { %183 = vst [vmem:[#allocation3] sm:$0xff] %v179_v14  ;;  %v182_v16 = vadd.f32 %v243_v15, %v213_v10 }
  0xe8   :  { %v145_v17 = vpop.f32.mrf.mxu0 }
  0xe9   :  { %186 = vst [vmem:[#allocation3 + $0x18] sm:$0xff] %v182_v16  ;;  %v180_v18 = vadd.f32 %v213_v10, %v145_v17 }
  0xeb   :  { %184 = vst [vmem:[#allocation3 + $0x8] sm:$0xff] %v180_v18 }
  0xec   :  { %268 = shalt.err (!%p265_p4)
}
  0xed   :  { %s280_s1 = smov 128   ;;  %s281_s2 = smov 8  }
  0xee   :  { %198 = dma.vmem_to_hbm [thread:$0]  %s193_s8, 512, %s341_s3, [#allocation4], %s280_s1, %s280_s1, %s281_s2  }
  0xef   :  { %277 = dma.done.wait [#allocation4], 512  }
  0xf0   :  { %278 = vsyncadd [#allocation4], 4294966784 }
  0xf1   :  { %202 = vsyncpa [#allocation4], 1 }

</bundles_post_ra>
